<compile_context>
chip_gen: v7x
topology: tpu7x:2x2x1
jax: 0.10.0
libtpu: 0.0.40
codegen_flags: <defaults>
</compile_context>

<pallas_src>
import math

import jax
import jax.numpy as jnp
from jax import lax
from jax.experimental import pallas as pl
from jax.experimental.pallas import tpu as pltpu

_INV_SQRT2 = 1.0 / math.sqrt(2.0)


def _round_up(x, m):
    return ((x + m - 1) // m) * m


def _gelu_erf(h):
    # Exact erf-based GELU (matches torch.nn.GELU() default), computed in f32.
    return 0.5 * h * (1.0 + lax.erf(h * _INV_SQRT2))


def _mlp_kernel_single(x_ref, w1_ref, b1_ref, w2_ref, b2_ref, o_ref):
    """Whole hidden dim in one tile: fc1 -> GELU -> fc2, write output once."""
    h = jnp.dot(x_ref[...], w1_ref[...], preferred_element_type=jnp.float32)
    h = _gelu_erf(h + b1_ref[...])
    out = jnp.dot(h.astype(w2_ref.dtype), w2_ref[...],
                  preferred_element_type=jnp.float32)
    o_ref[...] = (out + b2_ref[...]).astype(o_ref.dtype)


def _mlp_kernel_tiled(x_ref, w1_ref, b1_ref, w2_ref, b2_ref, o_ref, acc_ref):
    """Hidden dim tiled on the trailing (arbitrary) grid axis.

    fc2 partial products accumulate into an f32 VMEM scratch; the output tile
    is written once, on the final hidden step.
    """
    j = pl.program_id(1)

    @pl.when(j == 0)
    def _init():
        acc_ref[...] = jnp.zeros_like(acc_ref)

    h = jnp.dot(x_ref[...], w1_ref[...], preferred_element_type=jnp.float32)
    h = _gelu_erf(h + b1_ref[...])
    acc_ref[...] += jnp.dot(h.astype(w2_ref.dtype), w2_ref[...],
                            preferred_element_type=jnp.float32)

    @pl.when(j == pl.num_programs(1) - 1)
    def _finalize():
        o_ref[...] = (acc_ref[...] + b2_ref[...]).astype(o_ref.dtype)


def mlp_pallas(x, w1, b1, w2, b2, *, tile_m=512, tile_h=512,
               compute_dtype=jnp.bfloat16):
    """x: (B, N, Cin). w1: (Cin, H), b1: (H,), w2: (H, Cout), b2: (Cout,).

    Matmuls run in `compute_dtype` (bf16 by default) with f32 accumulation;
    biases, GELU and the fc2 accumulator stay in f32.
    """
    B, N, Cin = x.shape
    H = w1.shape[1]
    Cout = w2.shape[1]
    M = B * N
    out_dtype = x.dtype
    cdt = jnp.dtype(compute_dtype)

    # --- tile / padding choices -------------------------------------------
    row_g = 16 if cdt.itemsize == 2 else 8          # sublane packing granule
    Cin_p = _round_up(Cin, 128)
    Cout_p = _round_up(Cout, 128)
    tile_h = _round_up(min(tile_h, _round_up(H, 128)), 128)
    H_p = _round_up(H, tile_h)

    tile_m = _round_up(min(tile_m, _round_up(M, row_g)), row_g)
    M_p = _round_up(M, tile_m)

    num_m = M_p // tile_m
    num_h = H_p // tile_h

    # --- pad operands (zero padding is exact: GELU(0)=0, zero rows/cols of W)
    x2 = jnp.pad(x.reshape(M, Cin).astype(cdt),
                 ((0, M_p - M), (0, Cin_p - Cin)))
    w1p = jnp.pad(w1.astype(cdt), ((0, Cin_p - Cin), (0, H_p - H)))
    b1p = jnp.pad(b1.astype(jnp.float32), (0, H_p - H)).reshape(1, H_p)
    w2p = jnp.pad(w2.astype(cdt), ((0, H_p - H), (0, Cout_p - Cout)))
    b2p = jnp.pad(b2.astype(jnp.float32), (0, Cout_p - Cout)).reshape(1, Cout_p)

    # --- VMEM budget -> scoped limit (v5e default ~16 MiB can be too small) --
    bpe = cdt.itemsize
    out_bpe = jnp.dtype(out_dtype).itemsize
    est = (2 * tile_m * Cin_p * bpe                      # x tile  (2 buffers)
           + 2 * tile_m * Cout_p * out_bpe               # out tile (2 buffers)
           + tile_m * Cout_p * 4                         # f32 accumulator
           + tile_m * tile_h * 4                         # f32 GELU intermediate
           + 2 * (Cin_p * tile_h + tile_h * Cout_p) * bpe  # w1 / w2 tiles
           + 2 * (tile_h + Cout_p) * 4)                  # biases
    vmem_limit_bytes = int(min(max(2 * est, 32 << 20), 64 << 20))

    if num_h == 1:
        call = pl.pallas_call(
            _mlp_kernel_single,
            out_shape=jax.ShapeDtypeStruct((M_p, Cout_p), out_dtype),
            grid_spec=pltpu.PrefetchScalarGridSpec(
                num_scalar_prefetch=0,
                grid=(num_m,),
                in_specs=[
                    pl.BlockSpec((tile_m, Cin_p), lambda i: (i, 0)),   # x
                    pl.BlockSpec((Cin_p, H_p), lambda i: (0, 0)),      # w1 (resident)
                    pl.BlockSpec((1, H_p), lambda i: (0, 0)),          # b1
                    pl.BlockSpec((H_p, Cout_p), lambda i: (0, 0)),     # w2 (resident)
                    pl.BlockSpec((1, Cout_p), lambda i: (0, 0)),       # b2
                ],
                out_specs=pl.BlockSpec((tile_m, Cout_p), lambda i: (i, 0)),
            ),
            compiler_params=pltpu.CompilerParams(
                dimension_semantics=("parallel",),
                vmem_limit_bytes=vmem_limit_bytes,
            ),
        )
    else:
        call = pl.pallas_call(
            _mlp_kernel_tiled,
            out_shape=jax.ShapeDtypeStruct((M_p, Cout_p), out_dtype),
            grid_spec=pltpu.PrefetchScalarGridSpec(
                num_scalar_prefetch=0,
                grid=(num_m, num_h),              # hidden (reduction) axis last
                in_specs=[
                    pl.BlockSpec((tile_m, Cin_p), lambda i, j: (i, 0)),   # x
                    pl.BlockSpec((Cin_p, tile_h), lambda i, j: (0, j)),   # w1
                    pl.BlockSpec((1, tile_h), lambda i, j: (0, j)),       # b1
                    pl.BlockSpec((tile_h, Cout_p), lambda i, j: (j, 0)),  # w2
                    pl.BlockSpec((1, Cout_p), lambda i, j: (0, 0)),       # b2
                ],
                out_specs=pl.BlockSpec((tile_m, Cout_p), lambda i, j: (i, 0)),
                scratch_shapes=[pltpu.VMEM((tile_m, Cout_p), jnp.float32)],
            ),
            compiler_params=pltpu.CompilerParams(
                # 'parallel' M axis shards across the 2 TensorCores on v7x;
                # harmless on v5e / v6e.
                dimension_semantics=("parallel", "arbitrary"),
                vmem_limit_bytes=vmem_limit_bytes,
            ),
        )

    out2 = call(x2, w1p, b1p, w2p, b2p)
    return out2[:M, :Cout].reshape(B, N, Cout)


def init_params(key, in_features, hidden_features, out_features, dtype=jnp.float32):
    # Deterministic synthetic init (mimics nn.Linear's uniform(+-1/sqrt(fan_in))).
    k1, k2, k3, k4 = jax.random.split(key, 4)
    lim1 = 1.0 / math.sqrt(in_features)
    lim2 = 1.0 / math.sqrt(hidden_features)
    # stored as (in, out), i.e. transposed relative to torch's (out, in)
    w1 = jax.random.uniform(k1, (in_features, hidden_features), dtype, -lim1, lim1)
    b1 = jax.random.uniform(k2, (hidden_features,), dtype, -lim1, lim1)
    w2 = jax.random.uniform(k3, (hidden_features, out_features), dtype, -lim2, lim2)
    b2 = jax.random.uniform(k4, (out_features,), dtype, -lim2, lim2)
    return w1, b1, w2, b2


def _reference(x, w1, b1, w2, b2):
    B, N, Cin = x.shape
    h = x.reshape(-1, Cin) @ w1 + b1
    h = _gelu_erf(h)
    return (h @ w2 + b2).reshape(B, N, w2.shape[1])


if __name__ == "__main__":
    key = jax.random.PRNGKey(0)
    kx, kp = jax.random.split(key)

    # Small test shapes (tokens layout; PVT flattens H*W spatial into N).
    B, N = 2, 40                 # M = 80 tokens
    in_features = 96             # padded to 128 lanes
    hidden_features = 200        # padded to 256
    out_features = 96            # padded to 128 lanes

    x = jax.random.normal(kx, (B, N, in_features), jnp.float32)
    w1, b1, w2, b2 = init_params(kp, in_features, hidden_features, out_features)

    ref = _reference(x, w1, b1, w2, b2)

    # Path 1: hidden fits one tile (production default tiling).
    out1 = jax.block_until_ready(mlp_pallas(x, w1, b1, w2, b2))
    # Path 2: force hidden tiling + small M tile to exercise the accumulator.
    out2 = jax.block_until_ready(
        mlp_pallas(x, w1, b1, w2, b2, tile_m=32, tile_h=128))

    assert out1.shape == ref.shape and out2.shape == ref.shape
    err1 = float(jnp.max(jnp.abs(out1 - ref)))
    err2 = float(jnp.max(jnp.abs(out2 - ref)))
    # Kernel matmuls run bf16 with f32 accumulation -> loose tolerance vs f32 ref.
    assert jnp.allclose(out1, ref, atol=3e-2, rtol=3e-2), f"single-tile mismatch (max abs err {err1})"
    assert jnp.allclose(out2, ref, atol=3e-2, rtol=3e-2), f"tiled-hidden mismatch (max abs err {err2})"

    print("KERNEL_OK")
</pallas_src>

<mosaic_0001>
module attributes {stable_mosaic.version = 11 : i64} {
  func.func @_mlp_kernel_single(%arg0: i32, %arg1: memref<80x128xbf16, #tpu.memory_space<vmem>>, %arg2: memref<128x256xbf16, #tpu.memory_space<vmem>>, %arg3: memref<1x256xf32, #tpu.memory_space<vmem>>, %arg4: memref<256x128xbf16, #tpu.memory_space<vmem>>, %arg5: memref<1x128xf32, #tpu.memory_space<vmem>>, %arg6: memref<80x128xf32, #tpu.memory_space<vmem>>) attributes {dimension_semantics = [#tpu.dimension_semantics<parallel>], iteration_bounds = array<i64: 1>, scalar_prefetch = 0 : i64, scratch_operands = 0 : i64, tpu.core_type = #tpu.core_type<tc>, window_params = [{transform_indices = @transform_0, window_bounds = array<i64: 80, 128>}, {pipeline_mode = #tpu.pipeline_mode<synchronous>, transform_indices = @transform_1, window_bounds = array<i64: 128, 256>}, {pipeline_mode = #tpu.pipeline_mode<synchronous>, transform_indices = @transform_2, window_bounds = array<i64: 1, 256>}, {pipeline_mode = #tpu.pipeline_mode<synchronous>, transform_indices = @transform_3, window_bounds = array<i64: 256, 128>}, {pipeline_mode = #tpu.pipeline_mode<synchronous>, transform_indices = @transform_4, window_bounds = array<i64: 1, 128>}, {transform_indices = @transform_5, window_bounds = array<i64: 80, 128>}]} {
    %c0 = arith.constant 0 : index
    %c0_0 = arith.constant 0 : index
    %0 = vector.load %arg1[%c0, %c0_0] : memref<80x128xbf16, #tpu.memory_space<vmem>>, vector<80x128xbf16>
    %c0_1 = arith.constant 0 : index
    %c0_2 = arith.constant 0 : index
    %1 = vector.load %arg2[%c0_1, %c0_2] : memref<128x256xbf16, #tpu.memory_space<vmem>>, vector<128x256xbf16>
    %cst = arith.constant dense<0.000000e+00> : vector<80x256xf32>
    %2 = tpu.matmul %0, %1, %cst {dimension_numbers = #tpu.dot_dimension_numbers<[1], [0], [0], [1], [0, 0, 1, 1], [], []>} : vector<80x128xbf16>, vector<128x256xbf16>, vector<80x256xf32> -> vector<80x256xf32>
    %c0_3 = arith.constant 0 : index
    %c0_4 = arith.constant 0 : index
    %3 = vector.load %arg3[%c0_3, %c0_4] : memref<1x256xf32, #tpu.memory_space<vmem>>, vector<1x256xf32>
    %4 = vector.broadcast %3 : vector<1x256xf32> to vector<80x256xf32>
    %5 = arith.addf %2, %4 : vector<80x256xf32>
    %cst_5 = arith.constant 5.000000e-01 : f32
    %6 = vector.broadcast %cst_5 : f32 to vector<80x256xf32>
    %7 = arith.mulf %6, %5 : vector<80x256xf32>
    %cst_6 = arith.constant 0.707106769 : f32
    %8 = vector.broadcast %cst_6 : f32 to vector<80x256xf32>
    %9 = arith.mulf %5, %8 : vector<80x256xf32>
    %10 = math.erf %9 : vector<80x256xf32>
    %cst_7 = arith.constant 1.000000e+00 : f32
    %11 = vector.broadcast %cst_7 : f32 to vector<80x256xf32>
    %12 = arith.addf %11, %10 : vector<80x256xf32>
    %13 = arith.mulf %7, %12 : vector<80x256xf32>
    %14 = arith.truncf %13 : vector<80x256xf32> to vector<80x256xbf16>
    %c0_8 = arith.constant 0 : index
    %c0_9 = arith.constant 0 : index
    %15 = vector.load %arg4[%c0_8, %c0_9] : memref<256x128xbf16, #tpu.memory_space<vmem>>, vector<256x128xbf16>
    %cst_10 = arith.constant dense<0.000000e+00> : vector<80x128xf32>
    %16 = tpu.matmul %14, %15, %cst_10 {dimension_numbers = #tpu.dot_dimension_numbers<[1], [0], [0], [1], [0, 0, 1, 1], [], []>} : vector<80x256xbf16>, vector<256x128xbf16>, vector<80x128xf32> -> vector<80x128xf32>
    %c0_11 = arith.constant 0 : index
    %c0_12 = arith.constant 0 : index
    %17 = vector.load %arg5[%c0_11, %c0_12] : memref<1x128xf32, #tpu.memory_space<vmem>>, vector<1x128xf32>
    %18 = vector.broadcast %17 : vector<1x128xf32> to vector<80x128xf32>
    %19 = arith.addf %16, %18 : vector<80x128xf32>
    %c0_13 = arith.constant 0 : index
    %c0_14 = arith.constant 0 : index
    %20 = vector.load %arg6[%c0_13, %c0_14] : memref<80x128xf32, #tpu.memory_space<vmem>>, vector<80x128xf32>
    tpu.vector_store %arg6[%c0_13, %c0_14], %19 {strides = array<i32>} : memref<80x128xf32, #tpu.memory_space<vmem>>, vector<80x128xf32>,
    return
  }
  func.func @transform_0(%arg0: i32) -> (i32, i32) {
    %c0_i32 = arith.constant 0 : i32
    %c0_i32_0 = arith.constant 0 : i32
    return %arg0, %c0_i32 : i32, i32
  }
  func.func @transform_1(%arg0: i32) -> (i32, i32) {
    %c0_i32 = arith.constant 0 : i32
    %c0_i32_0 = arith.constant 0 : i32
    %c0_i32_1 = arith.constant 0 : i32
    return %c0_i32, %c0_i32_0 : i32, i32
  }
  func.func @transform_2(%arg0: i32) -> (i32, i32) {
    %c0_i32 = arith.constant 0 : i32
    %c0_i32_0 = arith.constant 0 : i32
    %c0_i32_1 = arith.constant 0 : i32
    return %c0_i32, %c0_i32_0 : i32, i32
  }
  func.func @transform_3(%arg0: i32) -> (i32, i32) {
    %c0_i32 = arith.constant 0 : i32
    %c0_i32_0 = arith.constant 0 : i32
    %c0_i32_1 = arith.constant 0 : i32
    return %c0_i32, %c0_i32_0 : i32, i32
  }
  func.func @transform_4(%arg0: i32) -> (i32, i32) {
    %c0_i32 = arith.constant 0 : i32
    %c0_i32_0 = arith.constant 0 : i32
    %c0_i32_1 = arith.constant 0 : i32
    return %c0_i32, %c0_i32_0 : i32, i32
  }
  func.func @transform_5(%arg0: i32) -> (i32, i32) {
    %c0_i32 = arith.constant 0 : i32
    %c0_i32_0 = arith.constant 0 : i32
    return %arg0, %c0_i32 : i32, i32
  }
}

</mosaic_0001>

<bundles_post_ra>
// kernel: tpu_custom_call.1
= control target key start
LH: loop header
LB: loop body
LE: loop exit
PB: predicated region body
PF: predicated region fallthrough
CT: control target
= control target key end

     0   :  { %10 = vsyncpa [#allocation3], 0  ;;  %s1059_s0 = inlined_call_operand.hbm [shape: bf16[80,128], index: 0, kind: input, shape index: {}]   ;;  %s1060_s1 = inlined_call_operand.hbm [shape: bf16[128,256], index: 1, kind: input, shape index: {}]   ;;  %s1061_s2 = inlined_call_operand.vmem [shape: f32[1,256], index: 2, kind: input, shape index: {}]   ;;  %s1062_s3 = inlined_call_operand.hbm [shape: bf16[256,128], index: 3, kind: input, shape index: {}]   ;;  %s1063_s4 = inlined_call_operand.vmem [shape: f32[1,128], index: 4, kind: input, shape index: {}]   ;;  %s1064_s5 = inlined_call_operand.hbm [shape: f32[80,128], index: 5, kind: output, shape index: {}]  }
   0x1   :  { %11 = vsyncpa [#allocation6], 0 }
   0x2   :  { %12 = vsyncpa [#allocation4], 0  ;;  %s912_s18 = smov [#allocation5]   ;;  %s818_s22 = scalar_lea.hbm %s1060_s1, 2048 }
   0x3   :  { %s30_s19 = sshll.u32 %s912_s18, 4  ;;  %p819_p0 = scmp.ne.s32.totalorder %s1060_s1, %s818_s22  ;;  %s31_s19 = int_to_ptr.vmem [resolvable:$true] %s30_s19 }
   0x4   :  { %p822_p1 = scmp.lt.u32.totalorder %s818_s22, %s1060_s1 }
   0x6   :  { %p824_p2 = pnand %p822_p1, %p819_p0 }
   0x8   :  { %827 = shalt.err (!%p824_p2)
}
   0x9   :  { %s828_s27 = scalar_lea.vmem %s31_s19, 2048  ;;  %p833_p4 = scmp.lt.s32.totalorder %s31_s19, %s31_s19 }
   0xa   :  { %p829_p3 = scmp.ne.s32.totalorder %s31_s19, %s828_s27  ;;  %p834_p5 = scmp.lt.s32.totalorder %s828_s27, %s828_s27 }
   0xc   :  { %p835_p6 = por %p834_p5, %p833_p4 }
   0xe   :  { %p836_p7 = pnand %p835_p6, %p829_p3 }
  0x10   :  { %839 = shalt.err (!%p836_p7)
}
  0x11   :  { %s913_s28 = smov 128   ;;  %s914_s29 = smov 8  }
  0x12   :  { %36 = dma.hbm_to_vmem [thread:$0]  %s1060_s1, 2048, %s31_s19, [#allocation6], %s913_s28, %s913_s28, %s914_s29  }
  0x13   :  { %s915_s7 = smov [#allocation2]   ;;  %s840_s11 = scalar_lea.hbm %s1059_s0, 640 }
  0x14   :  { %s18_s8 = sshll.u32 %s915_s7, 4  ;;  %p841_p8 = scmp.ne.s32.totalorder %s1059_s0, %s840_s11  ;;  %s19_s8 = int_to_ptr.vmem [resolvable:$true] %s18_s8 }
  0x15   :  { %p844_p9 = scmp.lt.u32.totalorder %s840_s11, %s1059_s0 }
  0x17   :  { %p846_p10 = pnand %p844_p9, %p841_p8 }
  0x19   :  { %849 = shalt.err (!%p846_p10)
}
  0x1a   :  { %s850_s16 = scalar_lea.vmem %s19_s8, 640  ;;  %p855_p12 = scmp.lt.s32.totalorder %s19_s8, %s19_s8 }
  0x1b   :  { %p851_p11 = scmp.ne.s32.totalorder %s19_s8, %s850_s16  ;;  %p856_p13 = scmp.lt.s32.totalorder %s850_s16, %s850_s16 }
  0x1d   :  { %p857_p0 = por %p856_p13, %p855_p12 }
  0x1f   :  { %p858_p1 = pnand %p857_p0, %p851_p11 }
  0x21   :  { %861 = shalt.err (!%p858_p1)
}
  0x22   :  { %s916_s1 = smov 64   ;;  %s917_s17 = smov 4  }
  0x23   :  { %24 = dma.hbm_to_vmem [thread:$0]  %s1059_s0, 640, %s19_s8, [#allocation3], %s916_s1, %s916_s1, %s917_s17  }
  0x24   :  { %s918_s20 = smov [#allocation7]   ;;  %s862_s24 = scalar_lea.hbm %s1062_s3, 2048 }
  0x25   :  { %s44_s21 = sshll.u32 %s918_s20, 4  ;;  %p863_p2 = scmp.ne.s32.totalorder %s1062_s3, %s862_s24  ;;  %s45_s21 = int_to_ptr.vmem [resolvable:$true] %s44_s21 }
  0x26   :  { %p866_p3 = scmp.lt.u32.totalorder %s862_s24, %s1062_s3 }
  0x28   :  { %p868_p4 = pnand %p866_p3, %p863_p2 }
  0x2a   :  { %871 = shalt.err (!%p868_p4)
}
  0x2b   :  { %s872_s6 = scalar_lea.vmem %s45_s21, 2048  ;;  %p877_p6 = scmp.lt.s32.totalorder %s45_s21, %s45_s21 }
  0x2c   :  { %p873_p5 = scmp.ne.s32.totalorder %s45_s21, %s872_s6  ;;  %p878_p7 = scmp.lt.s32.totalorder %s872_s6, %s872_s6 }
  0x2e   :  { %p879_p8 = por %p878_p7, %p877_p6 }
  0x30   :  { %p880_p9 = pnand %p879_p8, %p873_p5 }
  0x32   :  { %883 = shalt.err (!%p880_p9)
}
  0x33   :  { %50 = dma.hbm_to_vmem [thread:$0]  %s1062_s3, 2048, %s45_s21, [#allocation6], %s916_s1, %s916_s1, %s917_s17  }
  0x34   :  { %906 = dma.done.wait [#allocation3], 640  }
  0x35   :  { %907 = vsyncadd [#allocation3], 4294966656 }
  0x36   :  { %908 = dma.done.wait [#allocation6], 4096  }
  0x37   :  { %909 = vsyncadd [#allocation6], 4294963200  ;;  %v919_v0 = vmov 0   ;;  %v733_v1 = vld [vmem:[#allocation5 + $0x4] ss:$8 sps:$4 sm:$0xff]   ;;  %v757_v21 = vld [vmem:[#allocation2] sm:$0xff]   ;;  %v91_v38 = vlaneseq }
  0x38   :  { %243 = vmatprep.mubr.bf16.mxu0 %v919_v0  ;;  %v735_v2 = vld [vmem:[#allocation5] ss:$8 sps:$4 sm:$0xff]   ;;  %211 = vmatprep.subr.bf16.mxu0 %v733_v1  ;;  %v736_v3 = vld [vmem:[#allocation5 + $0x14] ss:$8 sps:$4 sm:$0xff]   ;;  %v738_v4 = vld [vmem:[#allocation5 + $0x10] ss:$8 sps:$4 sm:$0xff]  }
  0x39   :  { %212 = vmatpush1.bf16.msra.mxu0 %v735_v2  ;;  %v739_v5 = vld [vmem:[#allocation5 + $0x24] ss:$8 sps:$4 sm:$0xff]   ;;  %v741_v6 = vld [vmem:[#allocation5 + $0x20] ss:$8 sps:$4 sm:$0xff]   ;;  %v742_v7 = vld [vmem:[#allocation5 + $0x34] ss:$8 sps:$4 sm:$0xff]  }
  0x3a   :  { %213 = vmatprep.subr.bf16.mxu0 %v736_v3  ;;  %v744_v8 = vld [vmem:[#allocation5 + $0x30] ss:$8 sps:$4 sm:$0xff]   ;;  %v745_v9 = vld [vmem:[#allocation5 + $0x44] ss:$8 sps:$4 sm:$0xff]   ;;  %v747_v10 = vld [vmem:[#allocation5 + $0x40] ss:$8 sps:$4 sm:$0xff]  }
  0x3b   :  { %v748_v11 = vld [vmem:[#allocation5 + $0x54] ss:$8 sps:$4 sm:$0xff]   ;;  %v762_v12 = vld [vmem:[#allocation7 + $0x40] sm:$0xff]   ;;  %v750_v13 = vld [vmem:[#allocation5 + $0x50] ss:$8 sps:$4 sm:$0xff]   ;;  %v92_v39 = vshrl.u32 %v91_v38, 7 }
  0x3c   :  { %v763_v14 = vld [vmem:[#allocation7] sm:$0xff]   ;;  %678 = vmatprep.subr.bf16.mxu1 %v762_v12  ;;  %v764_v15 = vld [vmem:[#allocation7 + $0x48] sm:$0xff]   ;;  %v754_v19 = vld [vmem:[#allocation5 + $0x74] ss:$8 sps:$4 sm:$0xff]  }
  0x3d   :  { %214 = vmatpush1.bf16.msra.mxu0 %v738_v4  ;;  %v751_v16 = vld [vmem:[#allocation5 + $0x64] ss:$8 sps:$4 sm:$0xff]   ;;  %679 = vmatpush3.bf16.msra.mxu1 %v763_v14  ;;  %v753_v18 = vld [vmem:[#allocation5 + $0x60] ss:$8 sps:$4 sm:$0xff]   ;;  %v756_v20 = vld [vmem:[#allocation5 + $0x70] ss:$8 sps:$4 sm:$0xff]  }
  0x3e   :  { %215 = vmatprep.subr.bf16.mxu0 %v739_v5  ;;  %v765_v17 = vld [vmem:[#allocation7 + $0x8] sm:$0xff]   ;;  %680 = vmatprep.subr.bf16.mxu1 %v764_v15  ;;  %v758_v22 = vld [vmem:[#allocation2 + $0x8] sm:$0xff]   ;;  %v760_v24 = vld [vmem:[#allocation2 + $0x18] sm:$0xff]   ;;  %v93_v40 = vsub.s32 0, %v92_v39  ;;  %v97_v42 = vsub.s32 1, %v92_v39 }
  0x3f   :  { %v759_v23 = vld [vmem:[#allocation2 + $0x10] sm:$0xff]   ;;  %v761_v25 = vld [vmem:[#allocation2 + $0x20] sm:$0xff]   ;;  %v766_v26 = vld [vmem:[#allocation7 + $0x50] sm:$0xff]  }
  0x40   :  { %v767_v27 = vld [vmem:[#allocation7 + $0x10] sm:$0xff]   ;;  %v768_v28 = vld [vmem:[#allocation7 + $0x58] sm:$0xff]   ;;  %v770_v30 = vld [vmem:[#allocation7 + $0x60] sm:$0xff]  }
  0x41   :  { %216 = vmatpush1.bf16.msra.mxu0 %v741_v6  ;;  %681 = vmatpush3.bf16.msra.mxu1 %v765_v17  ;;  %v769_v29 = vld [vmem:[#allocation7 + $0x18] sm:$0xff]   ;;  %v771_v31 = vld [vmem:[#allocation7 + $0x20] sm:$0xff]   ;;  %v772_v32 = vld [vmem:[#allocation7 + $0x68] sm:$0xff]  }
  0x42   :  { %217 = vmatprep.subr.bf16.mxu0 %v742_v7  ;;  %682 = vmatprep.subr.bf16.mxu1 %v766_v26  ;;  %v773_v33 = vld [vmem:[#allocation7 + $0x28] sm:$0xff]   ;;  %v774_v34 = vld [vmem:[#allocation7 + $0x70] sm:$0xff]   ;;  %v776_v36 = vld [vmem:[#allocation7 + $0x78] sm:$0xff]  }
  0x43   :  { %v775_v35 = vld [vmem:[#allocation7 + $0x30] sm:$0xff]   ;;  %v777_v37 = vld [vmem:[#allocation7 + $0x38] sm:$0xff]  }
  0x44   :  { %v89_v41 = vld [vmem:[%s1061_s2] sm:$0x3] }
  0x45   :  { %218 = vmatpush1.bf16.msra.mxu0 %v744_v8  ;;  %683 = vmatpush3.bf16.msra.mxu1 %v767_v27  ;;  %v993_v43 = vrot.slane %v89_v41, %v93_v40  ;;  %v995_v44 = vrot.slane %v89_v41, %v97_v42 }
  0x46   :  { %219 = vmatprep.subr.bf16.mxu0 %v745_v9  ;;  %684 = vmatprep.subr.bf16.mxu1 %v768_v28 }
  0x49   :  { %220 = vmatpush1.bf16.msra.mxu0 %v747_v10  ;;  %685 = vmatpush3.bf16.msra.mxu1 %v769_v29 }
  0x4a   :  { %221 = vmatprep.subr.bf16.mxu0 %v748_v11  ;;  %686 = vmatprep.subr.bf16.mxu1 %v770_v30 }
  0x4d   :  { %222 = vmatpush1.bf16.msra.mxu0 %v750_v13  ;;  %687 = vmatpush3.bf16.msra.mxu1 %v771_v31 }
  0x4e   :  { %223 = vmatprep.subr.bf16.mxu0 %v751_v16  ;;  %688 = vmatprep.subr.bf16.mxu1 %v772_v32 }
  0x51   :  { %224 = vmatpush1.bf16.msra.mxu0 %v753_v18  ;;  %689 = vmatpush3.bf16.msra.mxu1 %v773_v33 }
  0x52   :  { %225 = vmatprep.subr.bf16.mxu0 %v754_v19  ;;  %690 = vmatprep.subr.bf16.mxu1 %v774_v34 }
  0x55   :  { %226 = vmatpush1.bf16.msra.mxu0 %v756_v20  ;;  %691 = vmatpush3.bf16.msra.mxu1 %v775_v35 }
  0x56   :  { %692 = vmatprep.subr.bf16.mxu1 %v776_v36 }
  0x58   :  { %244 = vmatmul.mubr.bf16.vlgmr.msra.gmra.mrb[0].mxu0 %v757_v21 }
  0x59   :  { %253 = vmatprep.mubr.bf16.mxu0 %v919_v0  ;;  %693 = vmatpush3.bf16.msra.mxu1 %v777_v37 }
  0x60   :  { %254 = vmatmul.mubr.bf16.gmra.mrb[4].mxu0 %v758_v22 }
  0x61   :  { %263 = vmatprep.mubr.bf16.mxu0 %v919_v0 }
  0x68   :  { %264 = vmatmul.mubr.bf16.gmra.mrb[8].mxu0 %v759_v23 }
  0x69   :  { %273 = vmatprep.mubr.bf16.mxu0 %v919_v0 }
  0x70   :  { %274 = vmatmul.mubr.bf16.gmra.mrb[12].mxu0 %v760_v24 }
  0x71   :  { %283 = vmatprep.mubr.bf16.mxu0 %v919_v0 }
  0x78   :  { %284 = vmatmul.mubr.bf16.gmra.mrb[16].mxu0 %v761_v25 }
 0x12b   :  { %v245_v45 = vpop.f32.mrb[0].mxu0 }
 0x12c   :  { %v246_v46 = vadd.f32 %v245_v45, %v993_v43  ;;  %v247_v47 = vpop.f32.mrb[1].mxu0 }
 0x12d   :  { %v248_v48 = vadd.f32 %v247_v47, %v995_v44  ;;  %v249_v49 = vpop.f32.mrb[2].mxu0 }
 0x12e   :  { %v314_v50 = vmul.f32 0.70710677, %v246_v46  ;;  %v250_v51 = vadd.f32 %v249_v49, %v993_v43  ;;  %v251_v52 = vpop.f32.mrb[3].mxu0  ;;  %v294_v9 = vmul.f32 0.5, %v246_v46 }
 0x12f   :  { %v315_v53 = vmul.f32 0.70710677, %v248_v48  ;;  %v252_v54 = vadd.f32 %v251_v52, %v995_v44  ;;  %v295_v19 = vmul.f32 0.5, %v248_v48 }
 0x130   :  { %778 = verf.f32 %v314_v50  ;;  %v316_v55 = vmul.f32 0.70710677, %v250_v51  ;;  %v296_v14 = vmul.f32 0.5, %v250_v51 }
 0x131   :  { %780 = verf.f32 %v315_v53  ;;  %v317_v56 = vmul.f32 0.70710677, %v252_v54  ;;  %v297_v25 = vmul.f32 0.5, %v252_v54 }
 0x132   :  { %782 = verf.f32 %v316_v55 }
 0x133   :  { %784 = verf.f32 %v317_v56  ;;  %v255_v57 = vpop.f32.mrb[4].mxu0 }
 0x134   :  { %v256_v58 = vadd.f32 %v255_v57, %v993_v43  ;;  %v257_v59 = vpop.f32.mrb[5].mxu0 }
 0x135   :  { %v258_v60 = vadd.f32 %v257_v59, %v995_v44  ;;  %v259_v61 = vpop.f32.mrb[6].mxu0 }
 0x136   :  { %v318_v62 = vmul.f32 0.70710677, %v256_v58  ;;  %v260_v63 = vadd.f32 %v259_v61, %v993_v43  ;;  %v261_v0 = vpop.f32.mrb[7].mxu0  ;;  %v298_v46 = vmul.f32 0.5, %v256_v58 }
 0x137   :  { %v319_v1 = vmul.f32 0.70710677, %v258_v60  ;;  %v262_v2 = vadd.f32 %v261_v0, %v995_v44  ;;  %v299_v51 = vmul.f32 0.5, %v258_v60 }
 0x138   :  { %786 = verf.f32 %v318_v62  ;;  %v320_v3 = vmul.f32 0.70710677, %v260_v63  ;;  %v300_v47 = vmul.f32 0.5, %v260_v63 }
 0x139   :  { %788 = verf.f32 %v319_v1  ;;  %v321_v4 = vmul.f32 0.70710677, %v262_v2  ;;  %v301_v52 = vmul.f32 0.5, %v262_v2 }
 0x13a   :  { %v779_v5 = vpop.eup %778  ;;  %790 = verf.f32 %v320_v3 }
 0x13b   :  { %v781_v6 = vpop.eup %780  ;;  %792 = verf.f32 %v321_v4  ;;  %v265_v7 = vpop.f32.mrb[8].mxu0  ;;  %v354_v10 = vadd.f32 1.0, %v779_v5 }
 0x13c   :  { %v783_v8 = vpop.eup %782  ;;  %v1006_v11 = vadd.f32 %v265_v7, %v993_v43  ;;  %v267_v12 = vpop.f32.mrb[9].mxu0  ;;  %v355_v18 = vadd.f32 1.0, %v781_v6 }
 0x13d   :  { %v785_v13 = vpop.eup %784  ;;  %v356_v15 = vadd.f32 1.0, %v783_v8  ;;  %v1009_v16 = vadd.f32 %v267_v12, %v995_v44  ;;  %v269_v17 = vpop.f32.mrb[10].mxu0  ;;  %v374_v28 = vmul.f32 %v354_v10, %v294_v9 }
 0x13e   :  { %v322_v20 = vmul.f32 0.70710677, %v1006_v11  ;;  %v1013_v21 = vadd.f32 %v269_v17, %v993_v43  ;;  %v271_v22 = vpop.f32.mrb[11].mxu0  ;;  %v357_v23 = vadd.f32 1.0, %v785_v13  ;;  %v375_v31 = vmul.f32 %v355_v18, %v295_v19 }
 0x13f   :  { %v376_v24 = vmul.f32 %v356_v15, %v296_v14  ;;  %v323_v26 = vmul.f32 0.70710677, %v1009_v16  ;;  %v1017_v27 = vadd.f32 %v271_v22, %v995_v44  ;;  %v302_v13 = vmul.f32 0.5, %v1006_v11 }
 0x140   :  { %794 = verf.f32 %v322_v20  ;;  %v324_v29 = vmul.f32 0.70710677, %v1013_v21  ;;  %v377_v32 = vmul.f32 %v357_v23, %v297_v25  ;;  %v304_v14 = vmul.f32 0.5, %v1013_v21 }
 0x141   :  { %796 = verf.f32 %v323_v26  ;;  %v325_v30 = vmul.f32 0.70710677, %v1017_v27  ;;  %v394_v34 = vpack.c.bf16 %v376_v24, %v374_v28  ;;  %v303_v19 = vmul.f32 0.5, %v1009_v16 }
 0x142   :  { %v787_v33 = vpop.eup %786  ;;  %798 = verf.f32 %v324_v29  ;;  %v395_v38 = vpack.c.bf16 %v377_v32, %v375_v31  ;;  %v305_v20 = vmul.f32 0.5, %v1017_v27 }
 0x143   :  { %v789_v35 = vpop.eup %788  ;;  %v358_v36 = vadd.f32 1.0, %v787_v33  ;;  %800 = verf.f32 %v325_v30  ;;  %v275_v37 = vpop.f32.mrb[12].mxu0 }
 0x144   :  { %v791_v39 = vpop.eup %790  ;;  %v359_v40 = vadd.f32 1.0, %v789_v35  ;;  %v1022_v41 = vadd.f32 %v275_v37, %v993_v43  ;;  %v277_v42 = vpop.f32.mrb[13].mxu0  ;;  %571 = vmatprep.mubr.bf16.mxu1 %v395_v38 }
 0x145   :  { %v793_v45 = vpop.eup %792  ;;  %v360_v48 = vadd.f32 1.0, %v791_v39  ;;  %v1025_v49 = vadd.f32 %v277_v42, %v995_v44  ;;  %v279_v50 = vpop.f32.mrb[14].mxu0  ;;  %572 = vmatmul.mubr.bf16.vlgmr.msra.gmra.mrb[0].mxu1 %v394_v34  ;;  %v378_v56 = vmul.f32 %v358_v36, %v298_v46 }
 0x146   :  { %v361_v53 = vadd.f32 1.0, %v793_v45  ;;  %v326_v54 = vmul.f32 0.70710677, %v1022_v41  ;;  %v281_v55 = vpop.f32.mrb[15].mxu0  ;;  %v280_v58 = vadd.f32 %v279_v50, %v993_v43  ;;  %v379_v61 = vmul.f32 %v359_v40, %v299_v51 }
 0x147   :  { %v380_v57 = vmul.f32 %v360_v48, %v300_v47  ;;  %v327_v59 = vmul.f32 0.70710677, %v1025_v49  ;;  %v282_v63 = vadd.f32 %v281_v55, %v995_v44 }
 0x148   :  { %v381_v62 = vmul.f32 %v361_v53, %v301_v52  ;;  %802 = verf.f32 %v326_v54  ;;  %v328_v0 = vmul.f32 0.70710677, %v280_v58  ;;  %v308_v39 = vmul.f32 0.5, %v280_v58 }
 0x149   :  { %804 = verf.f32 %v327_v59  ;;  %v396_v60 = vpack.c.bf16 %v380_v57, %v378_v56  ;;  %v329_v2 = vmul.f32 0.70710677, %v282_v63  ;;  %v309_v42 = vmul.f32 0.5, %v282_v63 }
 0x14a   :  { %v795_v1 = vpop.eup %794  ;;  %v397_v3 = vpack.c.bf16 %v381_v62, %v379_v61  ;;  %806 = verf.f32 %v328_v0 }
 0x14b   :  { %v797_v4 = vpop.eup %796  ;;  %v362_v5 = vadd.f32 1.0, %v795_v1  ;;  %v285_v6 = vpop.f32.mrb[16].mxu0  ;;  %808 = verf.f32 %v329_v2 }
 0x14c   :  { %v799_v7 = vpop.eup %798  ;;  %v363_v8 = vadd.f32 1.0, %v797_v4  ;;  %v286_v9 = vadd.f32 %v285_v6, %v993_v43  ;;  %v287_v10 = vpop.f32.mrb[17].mxu0  ;;  %579 = vmatprep.mubr.bf16.mxu1 %v397_v3  ;;  %v661_v6 = vld [vmem:[%s1063_s4] ss:$0 sm:$0xff]  ;;  %s920_s4 = smov [#allocation8]  }
 0x14d   :  { %v801_v12 = vpop.eup %800  ;;  %v364_v15 = vadd.f32 1.0, %v799_v7  ;;  %v288_v17 = vadd.f32 %v287_v10, %v995_v44  ;;  %v289_v18 = vpop.f32.mrb[18].mxu0  ;;  %580 = vmatmul.mubr.bf16.gmra.mrb[4].mxu1 %v396_v60  ;;  %v382_v25 = vmul.f32 %v362_v5, %v302_v13  ;;  %s627_s10 = sshll.u32 %s920_s4, 4  ;;  %s628_s10 = int_to_ptr.vmem [resolvable:$true] %s627_s10 }
 0x14e   :  { %v365_v22 = vadd.f32 1.0, %v801_v12  ;;  %v330_v23 = vmul.f32 0.70710677, %v286_v9  ;;  %v291_v24 = vpop.f32.mrb[19].mxu0  ;;  %v290_v29 = vadd.f32 %v289_v18, %v993_v43  ;;  %v383_v11 = vmul.f32 %v363_v8, %v303_v19  ;;  %s884_s11 = scalar_lea.vmem %s628_s10, 1280  ;;  %p889_p11 = scmp.lt.s32.totalorder %s628_s10, %s628_s10 }
 0x14f   :  { %v384_v26 = vmul.f32 %v364_v15, %v304_v14  ;;  %v331_v28 = vmul.f32 0.70710677, %v288_v17  ;;  %v292_v21 = vadd.f32 %v291_v24, %v995_v44  ;;  %v306_v43 = vmul.f32 0.5, %v1022_v41  ;;  %p885_p10 = scmp.ne.s32.totalorder %s628_s10, %s884_s11  ;;  %p890_p12 = scmp.lt.s32.totalorder %s884_s11, %s884_s11 }
 0x150   :  { %v385_v30 = vmul.f32 %v365_v22, %v305_v20  ;;  %810 = verf.f32 %v330_v23  ;;  %v332_v31 = vmul.f32 0.70710677, %v290_v29  ;;  %v307_v44 = vmul.f32 0.5, %v1025_v49 }
 0x151   :  { %812 = verf.f32 %v331_v28  ;;  %v398_v32 = vpack.c.bf16 %v384_v26, %v382_v25  ;;  %v333_v33 = vmul.f32 0.70710677, %v292_v21  ;;  %v310_v59 = vmul.f32 0.5, %v286_v9  ;;  %p891_p13 = por %p890_p12, %p889_p11 }
 0x152   :  { %v803_v16 = vpop.eup %802  ;;  %v399_v27 = vpack.c.bf16 %v385_v30, %v383_v11  ;;  %814 = verf.f32 %v332_v31  ;;  %v312_v58 = vmul.f32 0.5, %v290_v29  ;;  %v311_v49 = vmul.f32 0.5, %v288_v17 }
 0x153   :  { %v805_v34 = vpop.eup %804  ;;  %v366_v35 = vadd.f32 1.0, %v803_v16  ;;  %816 = verf.f32 %v333_v33  ;;  %v313_v62 = vmul.f32 0.5, %v292_v21  ;;  %p892_p0 = pnand %p891_p13, %p885_p10 }
 0x154   :  { %587 = vmatprep.mubr.bf16.mxu1 %v399_v27  ;;  %v807_v36 = vpop.eup %806  ;;  %v367_v37 = vadd.f32 1.0, %v805_v34 }
 0x155   :  { %v809_v38 = vpop.eup %808  ;;  %v368_v40 = vadd.f32 1.0, %v807_v36  ;;  %588 = vmatmul.mubr.bf16.gmra.mrb[8].mxu1 %v398_v32  ;;  %v386_v46 = vmul.f32 %v366_v35, %v306_v43 }
 0x156   :  { %v369_v45 = vadd.f32 1.0, %v809_v38  ;;  %v387_v48 = vmul.f32 %v367_v37, %v307_v44 }
 0x157   :  { %v388_v47 = vmul.f32 %v368_v40, %v308_v39 }
 0x158   :  { %v389_v50 = vmul.f32 %v369_v45, %v309_v42 }
 0x159   :  { %v400_v52 = vpack.c.bf16 %v388_v47, %v386_v46 }
 0x15a   :  { %v811_v51 = vpop.eup %810  ;;  %v401_v54 = vpack.c.bf16 %v389_v50, %v387_v48 }
 0x15b   :  { %v813_v53 = vpop.eup %812  ;;  %v370_v55 = vadd.f32 1.0, %v811_v51 }
 0x15c   :  { %v815_v56 = vpop.eup %814  ;;  %v371_v57 = vadd.f32 1.0, %v813_v53  ;;  %595 = vmatprep.mubr.bf16.mxu1 %v401_v54 }
 0x15d   :  { %v817_v41 = vpop.eup %816  ;;  %v372_v61 = vadd.f32 1.0, %v815_v56  ;;  %596 = vmatmul.mubr.bf16.gmra.mrb[12].mxu1 %v400_v52  ;;  %v390_v0 = vmul.f32 %v370_v55, %v310_v59 }
 0x15e   :  { %v373_v63 = vadd.f32 1.0, %v817_v41  ;;  %v391_v1 = vmul.f32 %v371_v57, %v311_v49 }
 0x15f   :  { %v392_v60 = vmul.f32 %v372_v61, %v312_v58 }
 0x160   :  { %v393_v2 = vmul.f32 %v373_v63, %v313_v62 }
 0x161   :  { %v402_v3 = vpack.c.bf16 %v392_v60, %v390_v0 }
 0x162   :  { %v403_v4 = vpack.c.bf16 %v393_v2, %v391_v1 }
 0x164   :  { %603 = vmatprep.mubr.bf16.mxu1 %v403_v4 }
 0x165   :  { %604 = vmatmul.mubr.bf16.gmra.mrb[16].mxu1 %v402_v3 }
 0x218   :  { %v694_v5 = vpop.f32.mrb[0].mxu1 }
 0x219   :  { %v695_v7 = vpop.f32.mrb[1].mxu1 }
 0x21a   :  { %v696_v8 = vadd.f32 %v695_v7, %v694_v5  ;;  %v697_v9 = vpop.f32.mrb[2].mxu1 }
 0x21b   :  { %v698_v10 = vpop.f32.mrb[3].mxu1 }
 0x21c   :  { %v574_v12 = vadd.f32 %v696_v8, %v661_v6  ;;  %v699_v13 = vadd.f32 %v698_v10, %v697_v9 }
 0x21e   :  { %612 = vst [vmem:[#allocation8] sm:$0xff] %v574_v12  ;;  %v577_v14 = vadd.f32 %v699_v13, %v661_v6 }
 0x220   :  { %613 = vst [vmem:[#allocation8 + $0x8] sm:$0xff] %v577_v14  ;;  %v700_v15 = vpop.f32.mrb[4].mxu1 }
 0x221   :  { %v701_v17 = vpop.f32.mrb[5].mxu1 }
 0x222   :  { %v702_v18 = vadd.f32 %v701_v17, %v700_v15  ;;  %v703_v19 = vpop.f32.mrb[6].mxu1 }
 0x223   :  { %v704_v20 = vpop.f32.mrb[7].mxu1 }
 0x224   :  { %v582_v22 = vadd.f32 %v702_v18, %v661_v6  ;;  %v705_v23 = vadd.f32 %v704_v20, %v703_v19 }
 0x226   :  { %614 = vst [vmem:[#allocation8 + $0x10] sm:$0xff] %v582_v22  ;;  %v585_v24 = vadd.f32 %v705_v23, %v661_v6 }
 0x228   :  { %615 = vst [vmem:[#allocation8 + $0x18] sm:$0xff] %v585_v24  ;;  %v706_v25 = vpop.f32.mrb[8].mxu1 }
 0x229   :  { %v707_v26 = vpop.f32.mrb[9].mxu1 }
 0x22a   :  { %v708_v28 = vadd.f32 %v707_v26, %v706_v25  ;;  %v709_v29 = vpop.f32.mrb[10].mxu1 }
 0x22b   :  { %v710_v11 = vpop.f32.mrb[11].mxu1 }
 0x22c   :  { %v590_v30 = vadd.f32 %v708_v28, %v661_v6  ;;  %v711_v21 = vadd.f32 %v710_v11, %v709_v29 }
 0x22e   :  { %616 = vst [vmem:[#allocation8 + $0x20] sm:$0xff] %v590_v30  ;;  %v593_v31 = vadd.f32 %v711_v21, %v661_v6 }
 0x230   :  { %617 = vst [vmem:[#allocation8 + $0x28] sm:$0xff] %v593_v31  ;;  %v712_v32 = vpop.f32.mrb[12].mxu1 }
 0x231   :  { %v713_v16 = vpop.f32.mrb[13].mxu1 }
 0x232   :  { %v714_v33 = vadd.f32 %v713_v16, %v712_v32  ;;  %v715_v27 = vpop.f32.mrb[14].mxu1 }
 0x233   :  { %v716_v34 = vpop.f32.mrb[15].mxu1 }
 0x234   :  { %v598_v35 = vadd.f32 %v714_v33, %v661_v6  ;;  %v717_v36 = vadd.f32 %v716_v34, %v715_v27 }
 0x236   :  { %618 = vst [vmem:[#allocation8 + $0x30] sm:$0xff] %v598_v35  ;;  %v601_v37 = vadd.f32 %v717_v36, %v661_v6 }
 0x238   :  { %619 = vst [vmem:[#allocation8 + $0x38] sm:$0xff] %v601_v37  ;;  %v718_v38 = vpop.f32.mrb[16].mxu1 }
 0x239   :  { %v719_v43 = vpop.f32.mrb[17].mxu1 }
 0x23a   :  { %v720_v39 = vadd.f32 %v719_v43, %v718_v38  ;;  %v721_v40 = vpop.f32.mrb[18].mxu1 }
 0x23b   :  { %v722_v44 = vpop.f32.mrb[19].mxu1 }
 0x23c   :  { %v606_v42 = vadd.f32 %v720_v39, %v661_v6  ;;  %v723_v45 = vadd.f32 %v722_v44, %v721_v40 }
 0x23e   :  { %620 = vst [vmem:[#allocation8 + $0x40] sm:$0xff] %v606_v42  ;;  %v609_v46 = vadd.f32 %v723_v45, %v661_v6 }
 0x240   :  { %621 = vst [vmem:[#allocation8 + $0x48] sm:$0xff] %v609_v46 }
 0x241   :  { %895 = shalt.err (!%p892_p0)
}
 0x242   :  { %s896_s14 = scalar_lea.hbm %s1064_s5, 1280 }
 0x243   :  { %p897_p1 = scmp.ne.s32.totalorder %s1064_s5, %s896_s14  ;;  %p900_p2 = scmp.lt.u32.totalorder %s896_s14, %s1064_s5 }
 0x245   :  { %p902_p3 = pnand %p900_p2, %p897_p1 }
 0x247   :  { %905 = shalt.err (!%p902_p3)
}
 0x248   :  { %633 = dma.vmem_to_hbm [thread:$0]  %s628_s10, 1280, %s1064_s5, [#allocation4], %s913_s28, %s913_s28, %s914_s29  }
 0x249   :  { %910 = dma.done.wait [#allocation4], 1280  }
 0x24a   :  { %911 = vsyncadd [#allocation4], 4294966016 }
 0x24b   :  { %637 = vsyncpa [#allocation3], 1 }
 0x24c   :  { %638 = vsyncpa [#allocation6], 1 }
 0x24d   :  { %639 = vsyncpa [#allocation4], 1 }

</bundles_post_ra>
